<compile_context>
chip_gen: v5e
topology: v5e:2x2
jax: 0.10.0
libtpu: 0.0.40
codegen_flags: <defaults>
</compile_context>

<pallas_src>
import functools

import numpy as np
import jax
import jax.numpy as jnp
from jax.experimental import pallas as pl
from jax.experimental.pallas import tpu as pltpu


def _round_up(x, m):
    return ((x + m - 1) // m) * m


def _dft_constants(H, W, Wrp, dtype):
    """Packed real DFT matrices; frequency axis zero-padded Wr -> Wrp.

    forward:  Z = Fh @ X @ Fw           (rfft2, no normalization)
    inverse:  x = Re( Gh @ Y @ Gw )     (irfft2, 1/(H*W), Hermitian weights,
                                         imag parts of DC/Nyquist cols dropped
                                         exactly as pocketfft does)
    """
    Wr = W // 2 + 1
    h = np.arange(H)
    w = np.arange(W)
    v = np.arange(Wr)

    Fw = np.exp(-2j * np.pi * np.outer(w, v) / W)               # (W, Wr)
    Fh = np.exp(-2j * np.pi * np.outer(h, h) / H)               # (H, H)
    Gh = np.exp(2j * np.pi * np.outer(h, h) / H) / H            # (H, H)
    wt = np.full((Wr,), 2.0)
    wt[0] = 1.0
    if W % 2 == 0:
        wt[-1] = 1.0                                            # Nyquist column
    Gw = wt[:, None] * np.exp(2j * np.pi * np.outer(v, w) / W) / W  # (Wr, W)

    pad = Wrp - Wr
    # forward W: one matmul, lanes = [re | im]
    fw_pack = np.concatenate([np.pad(Fw.real, ((0, 0), (0, pad))),
                              np.pad(Fw.imag, ((0, 0), (0, pad)))], axis=1)
    # forward H on stacked [re; im]
    fh_pack = np.block([[Fh.real, -Fh.imag], [Fh.imag, Fh.real]])   # (2H, 2H)
    # inverse H split into the real/imag input halves (avoids re-stacking y)
    gh_re = np.concatenate([Gh.real, Gh.imag], axis=0)              # (2H, H)
    gh_im = np.concatenate([-Gh.imag, Gh.real], axis=0)             # (2H, H)
    # inverse W: one matmul on lane-concatenated [u_re | u_im]
    gw_pack = np.concatenate([np.pad(Gw.real, ((0, pad), (0, 0))),
                              np.pad(-Gw.imag, ((0, pad), (0, 0)))], axis=0)

    cast = lambda a: jnp.asarray(a, dtype=dtype)
    return cast(fw_pack), cast(fh_pack), cast(gh_re), cast(gh_im), cast(gw_pack)


def filter_one_side(feature, conv_invariant, *, block_b=None,
                    dft_dtype=jnp.float32):
    """Pallas-TPU forward of Filter_One_Side.

    feature:        (N, C, H, W) float32
    conv_invariant: (C, H, W//2+1) float32 (real, any sign)
    returns (feature_invariant, feature - feature_invariant)

    dft_dtype=jnp.bfloat16 selects the native bf16 MXU path (v6e/v7x); the
    filter multiply, +1e-8 bias and all matmul accumulation stay in float32.
    """
    N, C, H, W = feature.shape
    Wr = W // 2 + 1
    assert conv_invariant.shape == (C, H, Wr)
    assert W % 2 == 0, "torch irfftn round-trip assumes even W"

    # Channel-block size: big enough to amortize the ~0.35us per-step pipeline
    # overhead at small H/W, small enough to respect v7x's 64 MiB VMEM.
    if block_b is None:
        block_b = int(np.clip((6 * 2**20) // max(1, H * W * 4), 1, 32))
    CB = int(min(block_b, C))
    Cp = _round_up(C, CB)
    n_cb = Cp // CB
    Wrp = _round_up(Wr, 8)              # zero-padded frequency columns
    cdt = jnp.dtype(dft_dtype)

    fw_p, fh_p, gh_re, gh_im, gw_p = _dft_constants(H, W, Wrp, cdt)

    # feature -> (N*Cp*H, W): channel-block and H folded into the matmul M dim.
    x = feature.astype(jnp.float32)
    if Cp != C:
        x = jnp.pad(x, ((0, 0), (0, Cp - C), (0, 0), (0, 0)))
    x2d = x.reshape(N * Cp * H, W)

    # Filter stored once (not replicated over batch) as (n_cb, H, CB*Wrp):
    # lanes are (channel-in-block, freq) matching the kernel's H-pass layout.
    # Padded freq columns / padded channels are exactly zero.
    kf = conv_invariant.astype(jnp.float32)
    kf = jnp.pad(kf, ((0, Cp - C), (0, 0), (0, Wrp - Wr)))
    kf3 = kf.reshape(n_cb, CB, H, Wrp).transpose(0, 2, 1, 3).reshape(
        n_cb, H, CB * Wrp)

    def kernel(x_ref, k_ref, fw_ref, fh_ref, ghr_ref, ghi_ref, gw_ref,
               o_ref, ts_ref, uc_ref):
        # ---- forward W-DFT: one fused matmul, lanes = [re | im] ------------
        t = jnp.dot(x_ref[...].astype(cdt), fw_ref[...],
                    preferred_element_type=jnp.float32)      # (CB*H, 2*Wrp)
        t = t.astype(cdt)
        # ---- relayout (CB*H, 2*Wrp) -> (2H, CB*Wrp) via static slice stores
        for c in range(CB):                                  # static unroll
            ts_ref[0:H, c * Wrp:(c + 1) * Wrp] = t[c * H:(c + 1) * H, 0:Wrp]
            ts_ref[H:2 * H, c * Wrp:(c + 1) * Wrp] = \
                t[c * H:(c + 1) * H, Wrp:2 * Wrp]
        # ---- forward H-DFT: single (2H,2H) @ (2H, CB*Wrp) matmul -----------
        z = jnp.dot(fh_ref[...], ts_ref[...],
                    preferred_element_type=jnp.float32)      # (2H, CB*Wrp) f32
        # ---- filtering (f32):  amp*k*exp(i*angle(z)) == k*z ----------------
        # +1e-8 is added to the real half only (matches `fft + 1e-8`).
        k = k_ref[0]                                         # (H, CB*Wrp) f32
        y_re = (k * (z[0:H, :] + jnp.float32(1e-8))).astype(cdt)
        y_im = (k * z[H:2 * H, :]).astype(cdt)
        # ---- inverse H-DFT: two (2H,H) matmuls (no re-stacking of y) -------
        u = jnp.dot(ghr_ref[...], y_re, preferred_element_type=jnp.float32)
        u = u + jnp.dot(ghi_ref[...], y_im, preferred_element_type=jnp.float32)
        u = u.astype(cdt)                                    # (2H, CB*Wrp)
        # ---- relayout back (2H, CB*Wrp) -> (CB*H, 2*Wrp) -------------------
        for c in range(CB):
            uc_ref[c * H:(c + 1) * H, 0:Wrp] = u[0:H, c * Wrp:(c + 1) * Wrp]
            uc_ref[c * H:(c + 1) * H, Wrp:2 * Wrp] = \
                u[H:2 * H, c * Wrp:(c + 1) * Wrp]
        # ---- inverse W-DFT (real part): one fused matmul --------------------
        out = jnp.dot(uc_ref[...], gw_ref[...],
                      preferred_element_type=jnp.float32)    # (CB*H, W)
        o_ref[...] = out.astype(o_ref.dtype)

    # ---- VMEM budget / cost hints ------------------------------------------
    csize = cdt.itemsize
    const_bytes = (4 * W * Wrp + 8 * H * H) * csize
    block_bytes = 2 * (CB * H * W * 4) * 2            # feature in + out, 2-buf
    filt_bytes = 2 * (H * CB * Wrp * 4)               # filter block, 2-buf
    scratch_bytes = 2 * (2 * H * CB * Wrp) * csize    # ts + uc scratch
    live_bytes = 6 * (2 * H * CB * Wrp) * 4           # f32 intermediates
    vmem_est = const_bytes + block_bytes + filt_bytes + scratch_bytes + live_bytes
    vmem_limit = int(min(112 * 2**20, max(32 * 2**20, int(1.5 * vmem_est))))

    flops = int(N * Cp * (8 * H * W * Wrp + 16 * H * H * Wrp))
    bytes_accessed = int(4 * (2 * N * Cp * H * W + Cp * H * Wrp)
                         + const_bytes)

    def const_spec(shape):
        # Constant index map + single buffering: loaded once, half the VMEM.
        return pl.BlockSpec(shape, lambda cb, n: (0,) * len(shape),
                            pipeline_mode=pl.Buffered(1))

    grid_spec = pltpu.PrefetchScalarGridSpec(
        num_scalar_prefetch=0,
        grid=(n_cb, N),                                   # batch innermost
        in_specs=[
            pl.BlockSpec((CB * H, W), lambda cb, n: (n * n_cb + cb, 0)),
            pl.BlockSpec((1, H, CB * Wrp), lambda cb, n: (cb, 0, 0)),
            const_spec((W, 2 * Wrp)),                     # Fw  [re | im]
            const_spec((2 * H, 2 * H)),                   # Fh packed
            const_spec((2 * H, H)),                       # Gh (real-input cols)
            const_spec((2 * H, H)),                       # Gh (imag-input cols)
            const_spec((2 * Wrp, W)),                     # Gw  [re ; -im]
        ],
        out_specs=pl.BlockSpec((CB * H, W), lambda cb, n: (n * n_cb + cb, 0)),
        scratch_shapes=[
            pltpu.VMEM((2 * H, CB * Wrp), cdt),           # stacked [re; im]
            pltpu.VMEM((CB * H, 2 * Wrp), cdt),           # lane-cat [re | im]
        ],
    )

    inv2d = pl.pallas_call(
        kernel,
        grid_spec=grid_spec,
        out_shape=jax.ShapeDtypeStruct((N * Cp * H, W), jnp.float32),
        compiler_params=pltpu.CompilerParams(
            dimension_semantics=("parallel", "parallel"),
            vmem_limit_bytes=vmem_limit),
        cost_estimate=pl.CostEstimate(flops=flops, transcendentals=0,
                                      bytes_accessed=bytes_accessed),
    )(x2d, kf3, fw_p, fh_p, gh_re, gh_im, gw_p)

    feature_invariant = inv2d.reshape(N, Cp, H, W)[:, :C]
    residual = feature - feature_invariant        # fused by XLA, not in-kernel
    return feature_invariant, residual


if __name__ == "__main__":
    # Small shapes consistent with the module (per-channel learnable filter
    # over the rfft2 half-spectrum).
    N, C, H, W = 2, 6, 16, 16
    Wr = W // 2 + 1

    key = jax.random.PRNGKey(0)
    k_feat, k_param = jax.random.split(key)
    feature = jax.random.normal(k_feat, (N, C, H, W), dtype=jnp.float32)
    # torch.rand(C, learnable_h, learnable_w) -> uniform [0, 1)
    conv_invariant = jax.random.uniform(k_param, (C, H, Wr), dtype=jnp.float32)

    # Pure-JAX reference mirroring the PyTorch forward.
    fft = jnp.fft.rfftn(feature, axes=(-2, -1)) + 1e-8
    amp = jnp.abs(fft)
    pha = jnp.angle(fft)
    ref_inv = jnp.fft.irfftn(amp * conv_invariant[None] * jnp.exp(1j * pha),
                             axes=(-2, -1))
    ref_res = feature - ref_inv

    # f32 DFT constants (default, v5e-safe). block_b=4 exercises channel-block
    # padding and a (2, 2) grid with the filter block reused across batch.
    fn32 = jax.jit(functools.partial(filter_one_side, block_b=4))
    inv32, res32 = fn32(feature, conv_invariant)
    jax.block_until_ready((inv32, res32))
    err_inv = float(jnp.max(jnp.abs(inv32 - ref_inv)))
    err_res = float(jnp.max(jnp.abs(res32 - ref_res)))
    assert err_inv < 5e-3, f"feature_invariant mismatch (f32): {err_inv}"
    assert err_res < 5e-3, f"residual mismatch (f32): {err_res}"

    # bf16 DFT constants: the v6e/v7x fast MXU path (filter multiply, eps and
    # accumulation stay f32). Looser tolerance: DFT error ~ sqrt(H*W) * 2^-9.
    fnbf = jax.jit(functools.partial(filter_one_side,
                                     dft_dtype=jnp.bfloat16))
    invbf, resbf = fnbf(feature, conv_invariant)
    jax.block_until_ready((invbf, resbf))
    err_bf = float(jnp.max(jnp.abs(invbf - ref_inv)))
    assert err_bf < 1e-1, f"feature_invariant mismatch (bf16): {err_bf}"

    print("KERNEL_OK")
</pallas_src>

<mosaic_0001>
module attributes {stable_mosaic.version = 11 : i64} {
  func.func @kernel(%arg0: i32, %arg1: i32, %arg2: memref<64x16xf32, #tpu.memory_space<vmem>>, %arg3: memref<1x16x64xf32, #tpu.memory_space<vmem>>, %arg4: memref<16x32xf32, #tpu.memory_space<vmem>>, %arg5: memref<32x32xf32, #tpu.memory_space<vmem>>, %arg6: memref<32x16xf32, #tpu.memory_space<vmem>>, %arg7: memref<32x16xf32, #tpu.memory_space<vmem>>, %arg8: memref<32x16xf32, #tpu.memory_space<vmem>>, %arg9: memref<64x16xf32, #tpu.memory_space<vmem>>, %arg10: memref<32x64xf32, #tpu.memory_space<vmem>>, %arg11: memref<64x32xf32, #tpu.memory_space<vmem>>) attributes {dimension_semantics = [#tpu.dimension_semantics<parallel>, #tpu.dimension_semantics<parallel>], iteration_bounds = array<i64: 2, 2>, scalar_prefetch = 0 : i64, scratch_operands = 2 : i64, tpu.core_type = #tpu.core_type<tc>, window_params = [{transform_indices = @transform_0, window_bounds = array<i64: 64, 16>}, {transform_indices = @transform_1, window_bounds = array<i64: 1, 16, 64>}, {pipeline_mode = #tpu.pipeline_mode<synchronous>, transform_indices = @transform_2, window_bounds = array<i64: 16, 32>}, {pipeline_mode = #tpu.pipeline_mode<synchronous>, transform_indices = @transform_3, window_bounds = array<i64: 32, 32>}, {pipeline_mode = #tpu.pipeline_mode<synchronous>, transform_indices = @transform_4, window_bounds = array<i64: 32, 16>}, {pipeline_mode = #tpu.pipeline_mode<synchronous>, transform_indices = @transform_5, window_bounds = array<i64: 32, 16>}, {pipeline_mode = #tpu.pipeline_mode<synchronous>, transform_indices = @transform_6, window_bounds = array<i64: 32, 16>}, {transform_indices = @transform_7, window_bounds = array<i64: 64, 16>}]} {
    %c0 = arith.constant 0 : index
    %c0_0 = arith.constant 0 : index
    %0 = vector.load %arg2[%c0, %c0_0] : memref<64x16xf32, #tpu.memory_space<vmem>>, vector<64x16xf32>
    %c0_1 = arith.constant 0 : index
    %c0_2 = arith.constant 0 : index
    %1 = vector.load %arg4[%c0_1, %c0_2] : memref<16x32xf32, #tpu.memory_space<vmem>>, vector<16x32xf32>
    %cst = arith.constant dense<0.000000e+00> : vector<64x32xf32>
    %2 = tpu.matmul %0, %1, %cst {dimension_numbers = #tpu.dot_dimension_numbers<[1], [0], [0], [1], [0, 0, 1, 1], [], []>} : vector<64x16xf32>, vector<16x32xf32>, vector<64x32xf32> -> vector<64x32xf32>
    %3 = vector.extract_strided_slice %2 {offsets = [0, 0], sizes = [16, 16], strides = [1, 1]} : vector<64x32xf32> to vector<16x16xf32>
    %c0_3 = arith.constant 0 : index
    %c0_4 = arith.constant 0 : index
    %4 = vector.load %arg10[%c0_3, %c0_4] : memref<32x64xf32, #tpu.memory_space<vmem>>, vector<16x16xf32>
    tpu.vector_store %arg10[%c0_3, %c0_4], %3 {strides = array<i32>} : memref<32x64xf32, #tpu.memory_space<vmem>>, vector<16x16xf32>,
    %5 = vector.extract_strided_slice %2 {offsets = [0, 16], sizes = [16, 16], strides = [1, 1]} : vector<64x32xf32> to vector<16x16xf32>
    %c16 = arith.constant 16 : index
    %c0_5 = arith.constant 0 : index
    %6 = vector.load %arg10[%c16, %c0_5] : memref<32x64xf32, #tpu.memory_space<vmem>>, vector<16x16xf32>
    tpu.vector_store %arg10[%c16, %c0_5], %5 {strides = array<i32>} : memref<32x64xf32, #tpu.memory_space<vmem>>, vector<16x16xf32>,
    %7 = vector.extract_strided_slice %2 {offsets = [16, 0], sizes = [16, 16], strides = [1, 1]} : vector<64x32xf32> to vector<16x16xf32>
    %c0_6 = arith.constant 0 : index
    %c16_7 = arith.constant 16 : index
    %8 = vector.load %arg10[%c0_6, %c16_7] : memref<32x64xf32, #tpu.memory_space<vmem>>, vector<16x16xf32>
    tpu.vector_store %arg10[%c0_6, %c16_7], %7 {strides = array<i32>} : memref<32x64xf32, #tpu.memory_space<vmem>>, vector<16x16xf32>,
    %9 = vector.extract_strided_slice %2 {offsets = [16, 16], sizes = [16, 16], strides = [1, 1]} : vector<64x32xf32> to vector<16x16xf32>
    %c16_8 = arith.constant 16 : index
    %c16_9 = arith.constant 16 : index
    %10 = vector.load %arg10[%c16_8, %c16_9] : memref<32x64xf32, #tpu.memory_space<vmem>>, vector<16x16xf32>
    tpu.vector_store %arg10[%c16_8, %c16_9], %9 {strides = array<i32>} : memref<32x64xf32, #tpu.memory_space<vmem>>, vector<16x16xf32>,
    %11 = vector.extract_strided_slice %2 {offsets = [32, 0], sizes = [16, 16], strides = [1, 1]} : vector<64x32xf32> to vector<16x16xf32>
    %c0_10 = arith.constant 0 : index
    %c32 = arith.constant 32 : index
    %12 = vector.load %arg10[%c0_10, %c32] : memref<32x64xf32, #tpu.memory_space<vmem>>, vector<16x16xf32>
    tpu.vector_store %arg10[%c0_10, %c32], %11 {strides = array<i32>} : memref<32x64xf32, #tpu.memory_space<vmem>>, vector<16x16xf32>,
    %13 = vector.extract_strided_slice %2 {offsets = [32, 16], sizes = [16, 16], strides = [1, 1]} : vector<64x32xf32> to vector<16x16xf32>
    %c16_11 = arith.constant 16 : index
    %c32_12 = arith.constant 32 : index
    %14 = vector.load %arg10[%c16_11, %c32_12] : memref<32x64xf32, #tpu.memory_space<vmem>>, vector<16x16xf32>
    tpu.vector_store %arg10[%c16_11, %c32_12], %13 {strides = array<i32>} : memref<32x64xf32, #tpu.memory_space<vmem>>, vector<16x16xf32>,
    %15 = vector.extract_strided_slice %2 {offsets = [48, 0], sizes = [16, 16], strides = [1, 1]} : vector<64x32xf32> to vector<16x16xf32>
    %c0_13 = arith.constant 0 : index
    %c48 = arith.constant 48 : index
    %16 = vector.load %arg10[%c0_13, %c48] : memref<32x64xf32, #tpu.memory_space<vmem>>, vector<16x16xf32>
    tpu.vector_store %arg10[%c0_13, %c48], %15 {strides = array<i32>} : memref<32x64xf32, #tpu.memory_space<vmem>>, vector<16x16xf32>,
    %17 = vector.extract_strided_slice %2 {offsets = [48, 16], sizes = [16, 16], strides = [1, 1]} : vector<64x32xf32> to vector<16x16xf32>
    %c16_14 = arith.constant 16 : index
    %c48_15 = arith.constant 48 : index
    %18 = vector.load %arg10[%c16_14, %c48_15] : memref<32x64xf32, #tpu.memory_space<vmem>>, vector<16x16xf32>
    tpu.vector_store %arg10[%c16_14, %c48_15], %17 {strides = array<i32>} : memref<32x64xf32, #tpu.memory_space<vmem>>, vector<16x16xf32>,
    %c0_16 = arith.constant 0 : index
    %c0_17 = arith.constant 0 : index
    %19 = vector.load %arg5[%c0_16, %c0_17] : memref<32x32xf32, #tpu.memory_space<vmem>>, vector<32x32xf32>
    %c0_18 = arith.constant 0 : index
    %c0_19 = arith.constant 0 : index
    %20 = vector.load %arg10[%c0_18, %c0_19] : memref<32x64xf32, #tpu.memory_space<vmem>>, vector<32x64xf32>
    %cst_20 = arith.constant dense<0.000000e+00> : vector<32x64xf32>
    %21 = tpu.matmul %19, %20, %cst_20 {dimension_numbers = #tpu.dot_dimension_numbers<[1], [0], [0], [1], [0, 0, 1, 1], [], []>} : vector<32x32xf32>, vector<32x64xf32>, vector<32x64xf32> -> vector<32x64xf32>
    %c0_21 = arith.constant 0 : index
    %c0_22 = arith.constant 0 : index
    %c0_23 = arith.constant 0 : index
    %22 = vector.load %arg3[%c0_21, %c0_22, %c0_23] : memref<1x16x64xf32, #tpu.memory_space<vmem>>, vector<1x16x64xf32>
    %23 = vector.shape_cast %22 : vector<1x16x64xf32> to vector<16x64xf32>
    %24 = vector.extract_strided_slice %21 {offsets = [0, 0], sizes = [16, 64], strides = [1, 1]} : vector<32x64xf32> to vector<16x64xf32>
    %cst_24 = arith.constant 9.99999993E-9 : f32
    %25 = vector.broadcast %cst_24 : f32 to vector<16x64xf32>
    %26 = arith.addf %24, %25 : vector<16x64xf32>
    %27 = arith.mulf %23, %26 : vector<16x64xf32>
    %28 = vector.extract_strided_slice %21 {offsets = [16, 0], sizes = [16, 64], strides = [1, 1]} : vector<32x64xf32> to vector<16x64xf32>
    %29 = arith.mulf %23, %28 : vector<16x64xf32>
    %c0_25 = arith.constant 0 : index
    %c0_26 = arith.constant 0 : index
    %30 = vector.load %arg6[%c0_25, %c0_26] : memref<32x16xf32, #tpu.memory_space<vmem>>, vector<32x16xf32>
    %cst_27 = arith.constant dense<0.000000e+00> : vector<32x64xf32>
    %31 = tpu.matmul %30, %27, %cst_27 {dimension_numbers = #tpu.dot_dimension_numbers<[1], [0], [0], [1], [0, 0, 1, 1], [], []>} : vector<32x16xf32>, vector<16x64xf32>, vector<32x64xf32> -> vector<32x64xf32>
    %c0_28 = arith.constant 0 : index
    %c0_29 = arith.constant 0 : index
    %32 = vector.load %arg7[%c0_28, %c0_29] : memref<32x16xf32, #tpu.memory_space<vmem>>, vector<32x16xf32>
    %cst_30 = arith.constant dense<0.000000e+00> : vector<32x64xf32>
    %33 = tpu.matmul %32, %29, %cst_30 {dimension_numbers = #tpu.dot_dimension_numbers<[1], [0], [0], [1], [0, 0, 1, 1], [], []>} : vector<32x16xf32>, vector<16x64xf32>, vector<32x64xf32> -> vector<32x64xf32>
    %34 = arith.addf %31, %33 : vector<32x64xf32>
    %35 = vector.extract_strided_slice %34 {offsets = [0, 0], sizes = [16, 16], strides = [1, 1]} : vector<32x64xf32> to vector<16x16xf32>
    %c0_31 = arith.constant 0 : index
    %c0_32 = arith.constant 0 : index
    %36 = vector.load %arg11[%c0_31, %c0_32] : memref<64x32xf32, #tpu.memory_space<vmem>>, vector<16x16xf32>
    tpu.vector_store %arg11[%c0_31, %c0_32], %35 {strides = array<i32>} : memref<64x32xf32, #tpu.memory_space<vmem>>, vector<16x16xf32>,
    %37 = vector.extract_strided_slice %34 {offsets = [16, 0], sizes = [16, 16], strides = [1, 1]} : vector<32x64xf32> to vector<16x16xf32>
    %c0_33 = arith.constant 0 : index
    %c16_34 = arith.constant 16 : index
    %38 = vector.load %arg11[%c0_33, %c16_34] : memref<64x32xf32, #tpu.memory_space<vmem>>, vector<16x16xf32>
    tpu.vector_store %arg11[%c0_33, %c16_34], %37 {strides = array<i32>} : memref<64x32xf32, #tpu.memory_space<vmem>>, vector<16x16xf32>,
    %39 = vector.extract_strided_slice %34 {offsets = [0, 16], sizes = [16, 16], strides = [1, 1]} : vector<32x64xf32> to vector<16x16xf32>
    %c16_35 = arith.constant 16 : index
    %c0_36 = arith.constant 0 : index
    %40 = vector.load %arg11[%c16_35, %c0_36] : memref<64x32xf32, #tpu.memory_space<vmem>>, vector<16x16xf32>
    tpu.vector_store %arg11[%c16_35, %c0_36], %39 {strides = array<i32>} : memref<64x32xf32, #tpu.memory_space<vmem>>, vector<16x16xf32>,
    %41 = vector.extract_strided_slice %34 {offsets = [16, 16], sizes = [16, 16], strides = [1, 1]} : vector<32x64xf32> to vector<16x16xf32>
    %c16_37 = arith.constant 16 : index
    %c16_38 = arith.constant 16 : index
    %42 = vector.load %arg11[%c16_37, %c16_38] : memref<64x32xf32, #tpu.memory_space<vmem>>, vector<16x16xf32>
    tpu.vector_store %arg11[%c16_37, %c16_38], %41 {strides = array<i32>} : memref<64x32xf32, #tpu.memory_space<vmem>>, vector<16x16xf32>,
    %43 = vector.extract_strided_slice %34 {offsets = [0, 32], sizes = [16, 16], strides = [1, 1]} : vector<32x64xf32> to vector<16x16xf32>
    %c32_39 = arith.constant 32 : index
    %c0_40 = arith.constant 0 : index
    %44 = vector.load %arg11[%c32_39, %c0_40] : memref<64x32xf32, #tpu.memory_space<vmem>>, vector<16x16xf32>
    tpu.vector_store %arg11[%c32_39, %c0_40], %43 {strides = array<i32>} : memref<64x32xf32, #tpu.memory_space<vmem>>, vector<16x16xf32>,
    %45 = vector.extract_strided_slice %34 {offsets = [16, 32], sizes = [16, 16], strides = [1, 1]} : vector<32x64xf32> to vector<16x16xf32>
    %c32_41 = arith.constant 32 : index
    %c16_42 = arith.constant 16 : index
    %46 = vector.load %arg11[%c32_41, %c16_42] : memref<64x32xf32, #tpu.memory_space<vmem>>, vector<16x16xf32>
    tpu.vector_store %arg11[%c32_41, %c16_42], %45 {strides = array<i32>} : memref<64x32xf32, #tpu.memory_space<vmem>>, vector<16x16xf32>,
    %47 = vector.extract_strided_slice %34 {offsets = [0, 48], sizes = [16, 16], strides = [1, 1]} : vector<32x64xf32> to vector<16x16xf32>
    %c48_43 = arith.constant 48 : index
    %c0_44 = arith.constant 0 : index
    %48 = vector.load %arg11[%c48_43, %c0_44] : memref<64x32xf32, #tpu.memory_space<vmem>>, vector<16x16xf32>
    tpu.vector_store %arg11[%c48_43, %c0_44], %47 {strides = array<i32>} : memref<64x32xf32, #tpu.memory_space<vmem>>, vector<16x16xf32>,
    %49 = vector.extract_strided_slice %34 {offsets = [16, 48], sizes = [16, 16], strides = [1, 1]} : vector<32x64xf32> to vector<16x16xf32>
    %c48_45 = arith.constant 48 : index
    %c16_46 = arith.constant 16 : index
    %50 = vector.load %arg11[%c48_45, %c16_46] : memref<64x32xf32, #tpu.memory_space<vmem>>, vector<16x16xf32>
    tpu.vector_store %arg11[%c48_45, %c16_46], %49 {strides = array<i32>} : memref<64x32xf32, #tpu.memory_space<vmem>>, vector<16x16xf32>,
    %c0_47 = arith.constant 0 : index
    %c0_48 = arith.constant 0 : index
    %51 = vector.load %arg11[%c0_47, %c0_48] : memref<64x32xf32, #tpu.memory_space<vmem>>, vector<64x32xf32>
    %c0_49 = arith.constant 0 : index
    %c0_50 = arith.constant 0 : index
    %52 = vector.load %arg8[%c0_49, %c0_50] : memref<32x16xf32, #tpu.memory_space<vmem>>, vector<32x16xf32>
    %cst_51 = arith.constant dense<0.000000e+00> : vector<64x16xf32>
    %53 = tpu.matmul %51, %52, %cst_51 {dimension_numbers = #tpu.dot_dimension_numbers<[1], [0], [0], [1], [0, 0, 1, 1], [], []>} : vector<64x32xf32>, vector<32x16xf32>, vector<64x16xf32> -> vector<64x16xf32>
    %c0_52 = arith.constant 0 : index
    %c0_53 = arith.constant 0 : index
    %54 = vector.load %arg9[%c0_52, %c0_53] : memref<64x16xf32, #tpu.memory_space<vmem>>, vector<64x16xf32>
    tpu.vector_store %arg9[%c0_52, %c0_53], %53 {strides = array<i32>} : memref<64x16xf32, #tpu.memory_space<vmem>>, vector<64x16xf32>,
    return
  }
  func.func @transform_0(%arg0: i32, %arg1: i32) -> (i32, i32) {
    %c2_i32 = arith.constant 2 : i32
    %0 = arith.muli %arg1, %c2_i32 : i32
    %1 = arith.addi %0, %arg0 : i32
    %c0_i32 = arith.constant 0 : i32
    %c0_i32_0 = arith.constant 0 : i32
    return %1, %c0_i32 : i32, i32
  }
  func.func @transform_1(%arg0: i32, %arg1: i32) -> (i32, i32, i32) {
    %c0_i32 = arith.constant 0 : i32
    %c0_i32_0 = arith.constant 0 : i32
    %c0_i32_1 = arith.constant 0 : i32
    return %arg0, %c0_i32, %c0_i32_0 : i32, i32, i32
  }
  func.func @transform_2(%arg0: i32, %arg1: i32) -> (i32, i32) {
    %c0_i32 = arith.constant 0 : i32
    %c0_i32_0 = arith.constant 0 : i32
    %c0_i32_1 = arith.constant 0 : i32
    return %c0_i32, %c0_i32_0 : i32, i32
  }
  func.func @transform_3(%arg0: i32, %arg1: i32) -> (i32, i32) {
    %c0_i32 = arith.constant 0 : i32
    %c0_i32_0 = arith.constant 0 : i32
    %c0_i32_1 = arith.constant 0 : i32
    return %c0_i32, %c0_i32_0 : i32, i32
  }
  func.func @transform_4(%arg0: i32, %arg1: i32) -> (i32, i32) {
    %c0_i32 = arith.constant 0 : i32
    %c0_i32_0 = arith.constant 0 : i32
    %c0_i32_1 = arith.constant 0 : i32
    return %c0_i32, %c0_i32_0 : i32, i32
  }
  func.func @transform_5(%arg0: i32, %arg1: i32) -> (i32, i32) {
    %c0_i32 = arith.constant 0 : i32
    %c0_i32_0 = arith.constant 0 : i32
    %c0_i32_1 = arith.constant 0 : i32
    return %c0_i32, %c0_i32_0 : i32, i32
  }
  func.func @transform_6(%arg0: i32, %arg1: i32) -> (i32, i32) {
    %c0_i32 = arith.constant 0 : i32
    %c0_i32_0 = arith.constant 0 : i32
    %c0_i32_1 = arith.constant 0 : i32
    return %c0_i32, %c0_i32_0 : i32, i32
  }
  func.func @transform_7(%arg0: i32, %arg1: i32) -> (i32, i32) {
    %c2_i32 = arith.constant 2 : i32
    %0 = arith.muli %arg1, %c2_i32 : i32
    %1 = arith.addi %0, %arg0 : i32
    %c0_i32 = arith.constant 0 : i32
    %c0_i32_0 = arith.constant 0 : i32
    return %1, %c0_i32 : i32, i32
  }
}

</mosaic_0001>

<bundles_post_ra>
// kernel: filter_one_side.1
= control target key start
LH: loop header
LB: loop body
LE: loop exit
PB: predicated region body
PF: predicated region fallthrough
CT: control target
= control target key end

     0   :  { %s1042_s24 = smov 0   ;;  %s1044_s25 = smov 0   ;;  %s1242_s0 = inlined_call_operand.vmem [shape: f32[256,16], index: 0, kind: input, shape index: {}]   ;;  %s1243_s1 = inlined_call_operand.vmem [shape: f32[2,16,64], index: 1, kind: input, shape index: {}]   ;;  %s1244_s2 = inlined_call_operand.vmem [shape: f32[16,32], index: 2, kind: input, shape index: {}]   ;;  %s1245_s3 = inlined_call_operand.vmem [shape: f32[32,32], index: 3, kind: input, shape index: {}]   ;;  %s1246_s4 = inlined_call_operand.vmem [shape: f32[32,16], index: 4, kind: input, shape index: {}]   ;;  %s1247_s5 = inlined_call_operand.vmem [shape: f32[32,16], index: 5, kind: input, shape index: {}]   ;;  %s1248_s6 = inlined_call_operand.vmem [shape: f32[32,16], index: 6, kind: input, shape index: {}]   ;;  %s1249_s7 = inlined_call_operand.vmem [shape: f32[256,16], index: 7, kind: output, shape index: {}]  }
   0x1   :  { %s1046_s26 = smov 0   ;;  %s1048_s27 = smov 0  }
   0x2   :  { %s1050_s28 = smov 0  }
   0x3 LB: > { %s26_s29 = sadd.s32 1, %s986_s26  ;;  %s29_s30 = sadd.s32 1, %s990_s27  ;;  %s994_s28 = sphi %s1050_s28, %s17_s28   ;;  %s990_s27 = sphi %s1048_s27, %s1253_s27   ;;  %s986_s26 = sphi %s1046_s26, %s1252_s26   ;;  %s982_s25 = sphi %s1044_s25, %s1251_s25   ;;  %s978_s24 = sphi %s1042_s24, %s1250_s24  }
   0x4   : > { %p27_p0 = scmp.ge.s32.totalorder %s26_s29, 2  ;;  %p860_p1 = scmp.ge.s32.totalorder %s994_s28, 1 }
   0x5   : > { %p272_p2 = scmp.lt.s32.totalorder %s994_s28, 5 }
   0x6   : > { %s1255_s29 = smov (%p27_p0, %s26_s29), 0  ;;  %s1257_s30 = smov (!%p27_p0, %s29_s30), %s990_s27 }
   0x7   : > { %p273_p3 = pnand %p860_p1, %p272_p2  ;;  %p31_p4 = scmp.ge.s32.totalorder %s1257_s30, 2 }
   0x8   : > { %s861_s12 = sshll.u32 (!%p273_p3), %s978_s24, 1  ;;  %s996_s19 = smov (!%p273_p3), 112  }
   0x9   : > { %s1259_s30 = smov (%p31_p4, %s1257_s30), 0  ;;  %276 = sbr.rel (%p273_p3) target bundleno = 906 (0x38a), region = 48 }
   0xa   : > { %s314_s13 = sadd.s32 (!%p273_p3), %s982_s25, %s861_s12  ;;  %s997_s20 = smov (!%p273_p3), 32  }
   0xb   : > { %s862_s14 = sshll.u32 (!%p273_p3), %s314_s13, 3  ;;  %s998_s21 = smov (!%p273_p3), 16  }
   0xc   : > { %p316_p5 = scmp.lt.s32.totalorder (!%p273_p3), %s862_s14, 31  ;;  %s999_s22 = smov (!%p273_p3), 48  }
   0xd   : > { %p323_p6 = scmp.lt.s32.totalorder (!%p273_p3), %s982_s25, 1  ;;  %s1001_s24 = smov (!%p273_p3), 80  }
   0xe   : > { %v347_v0 = vld [vmem:[%s1244_s2 + $0x8] sm:$0xff]  ;;  %v346_v1 = vld [vmem:[%s1244_s2] sm:$0xff]  ;;  %s1261_s14 = smov (!%p316_p5, %s862_s14), 31  ;;  %vm348_vm0 = vcmask 130048   ;;  %vm434_vm1 = vcmask 261248   ;;  %vm447_vm2 = vcmask 392448  }
   0xf   : > { %387 = vmatpush.msra.mxu0 %v347_v0  ;;  %900 = vmatpush.msra.mxu1 %v347_v0  ;;  %s863_s15 = sshll.u32 %s1261_s14, 3  ;;  %vm466_vm3 = vcmask 523648   ;;  %v477_v34 = vld [vmem:[%s1245_s3] sm:$0xff]  ;;  %vm485_vm4 = vcmask 261120   ;;  %v478_v35 = vld [vmem:[%s1245_s3 + $0x8] sm:$0xff]  ;;  %v479_v36 = vld [vmem:[%s1245_s3 + $0x10] sm:$0xff] }
  0x10   : > { %s319_s18 = scalar_lea.vmem %s1242_s0, %s863_s15  ;;  %v480_v37 = vld [vmem:[%s1245_s3 + $0x18] sm:$0xff]  ;;  %s1263_s25 = smov (!%p323_p6, %s982_s25), 1  ;;  %v536_v46 = vld [vmem:[%s1246_s4 + $0x8] sm:$0xff]  ;;  %v537_v48 = vld [vmem:[%s1246_s4 + $0x10] sm:$0xff] }
  0x11   : > { %388 = vmatpush.msra.mxu0 %v346_v1  ;;  %901 = vmatpush.msra.mxu1 %v346_v1  ;;  %v338_v2 = vld [vmem:[%s319_s18] sm:$0xff]  ;;  %v345_v3 = vld [vmem:[%s319_s18 + $0x38] sm:$0xff]  ;;  %v339_v4 = vld [vmem:[%s319_s18 + $0x8] sm:$0xff]  ;;  %s899_s16 = sshll.u32 %s1263_s25, 4  ;;  %s1000_s25 = smov 96  }
  0x12   : > { %869 = vmatmul.msk.f32.vlgmr.msra.gmra.mxu0 %vm348_vm0, %v338_v2  ;;  %876 = vmatmul.msk.f32.vlgmr.msra.gmra.mxu1 %vm348_vm0, %v345_v3  ;;  %v340_v5 = vld [vmem:[%s319_s18 + $0x10] sm:$0xff]  ;;  %v341_v6 = vld [vmem:[%s319_s18 + $0x18] sm:$0xff]  ;;  %v342_v7 = vld [vmem:[%s319_s18 + $0x20] sm:$0xff] }
  0x13   : > { %v343_v8 = vld [vmem:[%s319_s18 + $0x28] sm:$0xff]  ;;  %v344_v9 = vld [vmem:[%s319_s18 + $0x30] sm:$0xff]  ;;  %v539_v52 = vld [vmem:[%s1247_s5] sm:$0xff]  ;;  %s334_s18 = scalar_lea.vmem %s1249_s7, %s863_s15 }
  0x14   : > { %v540_v53 = vld [vmem:[%s1247_s5 + $0x8] sm:$0xff]  ;;  %v538_v54 = vld [vmem:[%s1246_s4 + $0x18] sm:$0xff]  ;;  %v541_v55 = vld [vmem:[%s1247_s5 + $0x10] sm:$0xff] }
  0x15   : > { %v535_v56 = vld [vmem:[%s1246_s4] sm:$0xff]  ;;  %v542_v57 = vld [vmem:[%s1247_s5 + $0x18] sm:$0xff] }
  0x1a   : > { %870 = vmatmul.msk.f32.gmra.mxu0 %vm348_vm0, %v339_v4 }
  0x22   : > { %871 = vmatmul.msk.f32.gmra.mxu0 %vm348_vm0, %v340_v5 }
  0x2a   : > { %872 = vmatmul.msk.f32.gmra.mxu0 %vm348_vm0, %v341_v6  ;;  %v692_v6 = vld [vmem:[%s1248_s6 + $0x18] sm:$0xff] }
  0x32   : > { %873 = vmatmul.msk.f32.gmra.mxu0 %vm348_vm0, %v342_v7  ;;  %v691_v7 = vld [vmem:[%s1248_s6 + $0x10] sm:$0xff] }
  0x3a   : > { %874 = vmatmul.msk.f32.gmra.mxu0 %vm348_vm0, %v343_v8  ;;  %v690_v8 = vld [vmem:[%s1248_s6 + $0x8] sm:$0xff] }
  0x42   : > { %875 = vmatmul.msk.f32.gmra.mxu0 %vm348_vm0, %v344_v9  ;;  %v689_v9 = vld [vmem:[%s1248_s6] sm:$0xff] }
  0x8f   : > { %v390_v10 = vpop.f32.mrf.mxu0  ;;  %v411_v11 = vpop.f32.mrf.mxu1 }
  0x90   : > { %414 = vst.msk [vmem:[#allocation2] sm:$0xff] %vm348_vm0, %v390_v10  ;;  %418 = vrot.lane.b32.xlu0 %v390_v10, %s996_s19  ;;  %471 = vrot.lane.b32.xlu1 %v411_v11, %s997_s20 }
  0x97   : > { %v393_v12 = vpop.f32.mrf.mxu0 }
  0x98   : > { %415 = vst.msk [vmem:[#allocation2 + $0x8] sm:$0xff] %vm348_vm0, %v393_v12  ;;  %420 = vrot.lane.b32.xlu0 %v393_v12, %s996_s19 }
  0x9f   : > { %v396_v13 = vpop.f32.mrf.mxu0 }
  0xa0   : > { %428 = vrot.lane.b32.xlu2 %v396_v13, %s998_s21 }
  0xa7   : > { %v399_v14 = vpop.f32.mrf.mxu0 }
  0xa8   : > { %430 = vrot.lane.b32.xlu2 %v399_v14, %s998_s21 }
  0xaf   : > { %v402_v15 = vpop.f32.mrf.mxu0 }
  0xb0   : > { %450 = vrot.lane.b32.xlu2 %v402_v15, %s998_s21 }
  0xb7   : > { %v405_v16 = vpop.f32.mrf.mxu0 }
  0xb8   : > { %452 = vrot.lane.b32.xlu1 %v405_v16, %s998_s21 }
  0xbf   : > { %v408_v17 = vpop.f32.mrf.mxu0 }
  0xc0   : > { %443 = vrot.lane.b32.xlu1 %v405_v16, %s997_s20  ;;  %460 = vrot.lane.b32.xlu2 %v408_v17, %s999_s22 }
  0xc1   : > { %469 = vrot.lane.b32.xlu0 %v408_v17, %s997_s20 }
  0xc8   : > { %441 = vrot.lane.b32.xlu1 %v402_v15, %s997_s20  ;;  %s327_s20 = scalar_lea.vmem %s1243_s1, %s899_s16 }
  0xc9   : > { %462 = vrot.lane.b32.xlu0 %v411_v11, %s999_s22  ;;  %v528_v40 = vld [vmem:[%s327_s20 + $0x8] sm:$0xff]  ;;  %v527_v43 = vld [vmem:[%s327_s20] sm:$0xff] }
  0xfa   : > { %v429_v18 = vpop.permute.xlu2 %428 }
  0xfb   : > { %435 = vst.msk [vmem:[#allocation2] sm:$0xff] %vm434_vm1, %v429_v18 }
 0x102   : > { %v419_v19 = vpop.permute.xlu0 %418  ;;  %v431_v20 = vpop.permute.xlu2 %430 }
 0x103   : > { %424 = vst.msk [vmem:[#allocation2 + $0x10] sm:$0xff] %vm348_vm0, %v419_v19  ;;  %v472_v23 = vpop.permute.xlu1 %471 }
 0x104   : > { %437 = vst.msk [vmem:[#allocation2 + $0x10] sm:$0xff] %vm434_vm1, %v396_v13 }
 0x105   : > { %436 = vst.msk [vmem:[#allocation2 + $0x8] sm:$0xff] %vm434_vm1, %v431_v20 }
 0x10a   : > { %v421_v21 = vpop.permute.xlu0 %420  ;;  %v451_v22 = vpop.permute.xlu2 %450 }
 0x10b   : > { %425 = vst.msk [vmem:[#allocation2 + $0x18] sm:$0xff] %vm348_vm0, %v421_v21 }
 0x10c   : > { %438 = vst.msk [vmem:[#allocation2 + $0x18] sm:$0xff] %vm434_vm1, %v399_v14 }
 0x10d   : > { %456 = vst.msk [vmem:[#allocation2 + $0x10] sm:$0xff] %vm447_vm2, %v451_v22 }
 0x11a   : > { %v461_v29 = vpop.permute.xlu2 %460 }
 0x12a   : > { %v453_v24 = vpop.permute.xlu1 %452 }
 0x12b   : > { %457 = vst.msk [vmem:[#allocation2 + $0x18] sm:$0xff] %vm447_vm2, %v453_v24 }
 0x12c   : > { %476 = vst.msk [vmem:[#allocation2 + $0x18] sm:$0xff] %vm466_vm3, %v472_v23 }
 0x132   : > { %v444_v25 = vpop.permute.xlu1 %443 }
 0x133   : > { %449 = vst.msk [vmem:[#allocation2 + $0x8] sm:$0xff] %vm447_vm2, %v444_v25  ;;  %v470_v26 = vpop.permute.xlu0 %469  ;;  %v484_v27 = vld [vmem:[#allocation2 + $0x18] sm:$0xff] }
 0x134   : > { %475 = vst.msk [vmem:[#allocation2 + $0x10] sm:$0xff] %vm466_vm3, %v470_v26  ;;  %510 = vmatpush.msrb.mxu1 %v484_v27 }
 0x13a   : > { %v442_v28 = vpop.permute.xlu1 %441 }
 0x13b   : > { %448 = vst.msk [vmem:[#allocation2] sm:$0xff] %vm447_vm2, %v442_v28  ;;  %v463_v30 = vpop.permute.xlu0 %462  ;;  %v483_v31 = vld [vmem:[#allocation2 + $0x10] sm:$0xff] }
 0x13c   : > { %467 = vst.msk [vmem:[#allocation2] sm:$0xff] %vm466_vm3, %v461_v29  ;;  %511 = vmatpush.msrb.mxu1 %v483_v31 }
 0x13d   : > { %468 = vst.msk [vmem:[#allocation2 + $0x8] sm:$0xff] %vm466_vm3, %v463_v30 }
 0x143   : > { %v481_v33 = vld [vmem:[#allocation2] sm:$0xff] }
 0x144   : > { %v482_v32 = vld [vmem:[#allocation2 + $0x8] sm:$0xff] }
 0x145   : > { %512 = vmatpush.msrb.mxu1 %v482_v32 }
 0x147   : > { %513 = vmatpush.msrb.mxu1 %v481_v33 }
 0x148   : > { %877 = vmatmul.msk.f32.vlgmr.msrb.gmra.mxu1 %vm485_vm4, %v477_v34 }
 0x150   : > { %878 = vmatmul.msk.f32.gmra.mxu1 %vm485_vm4, %v478_v35 }
 0x158   : > { %879 = vmatmul.msk.f32.gmra.mxu1 %vm485_vm4, %v479_v36 }
 0x160   : > { %880 = vmatmul.msk.f32.gmra.mxu1 %vm485_vm4, %v480_v37 }
 0x1c5   : > { %v515_v38 = vpop.f32.mrf.mxu1 }
 0x1c6   : > { %v529_v41 = vadd.f32 1e-08, %v515_v38 }
 0x1c8   : > { %v531_v45 = vmul.f32 %v529_v41, %v527_v43 }
 0x1cd   : > { %v518_v39 = vpop.f32.mrf.mxu1 }
 0x1ce   : > { %v530_v42 = vadd.f32 1e-08, %v518_v39 }
 0x1d0   : > { %v532_v44 = vmul.f32 %v530_v42, %v528_v40 }
 0x1d2   : > { %904 = vmatpush.msra.mxu3 %v532_v44 }
 0x1d4   : > { %905 = vmatpush.msra.mxu3 %v531_v45 }
 0x1d5   : > { %v521_v47 = vpop.f32.mrf.mxu1  ;;  %886 = vmatmul.msk.f32.vlgmr.msra.gmra.mxu3 %vm348_vm0, %v536_v46 }
 0x1d6   : > { %v533_v51 = vmul.f32 %v527_v43, %v521_v47  ;;  %906 = vmatpush.msrb.mxu3 %v692_v6 }
 0x1d8   : > { %907 = vmatpush.msrb.mxu3 %v691_v7 }
 0x1da   : > { %908 = vmatpush.msrb.mxu3 %v690_v8 }
 0x1dc   : > { %909 = vmatpush.msrb.mxu3 %v689_v9 }
 0x1dd   : > { %v524_v49 = vpop.f32.mrf.mxu1  ;;  %887 = vmatmul.msk.f32.gmra.mxu3 %vm348_vm0, %v537_v48 }
 0x1de   : > { %v534_v50 = vmul.f32 %v528_v40, %v524_v49 }
 0x1e0   : > { %569 = vmatpush.msra.mxu1 %v534_v50  ;;  %902 = vmatpush.msra.mxu2 %v534_v50 }
 0x1e2   : > { %570 = vmatpush.msra.mxu1 %v533_v51  ;;  %903 = vmatpush.msra.mxu2 %v533_v51 }
 0x1e3   : > { %881 = vmatmul.msk.f32.vlgmr.msra.gmra.mxu1 %vm348_vm0, %v539_v52  ;;  %882 = vmatmul.msk.f32.vlgmr.msra.gmra.mxu2 %vm348_vm0, %v540_v53 }
 0x1e4   : > { %610 = vmatpush.msrb.mxu1 %v532_v44  ;;  %729 = vmatpush.msrb.mxu2 %v692_v6 }
 0x1e5   : > { %888 = vmatmul.msk.f32.gmra.mxu3 %vm348_vm0, %v538_v54 }
 0x1e6   : > { %611 = vmatpush.msrb.mxu1 %v531_v45  ;;  %730 = vmatpush.msrb.mxu2 %v691_v7 }
 0x1e8   : > { %731 = vmatpush.msrb.mxu2 %v690_v8 }
 0x1ea   : > { %732 = vmatpush.msrb.mxu2 %v689_v9 }
 0x1eb   : > { %883 = vmatmul.msk.f32.gmra.mxu2 %vm348_vm0, %v541_v55  ;;  %885 = vmatmul.msk.f32.vlgmr.msrb.gmra.mxu1 %vm348_vm0, %v535_v56 }
 0x1f3   : > { %884 = vmatmul.msk.f32.gmra.mxu2 %vm348_vm0, %v542_v57 }
 0x258   : > { %v616_v59 = vpop.f32.mrf.mxu3 }
 0x260   : > { %v572_v58 = vpop.f32.mrf.mxu1  ;;  %v619_v0 = vpop.f32.mrf.mxu3 }
 0x266   : > { %v575_v60 = vpop.f32.mrf.mxu2 }
 0x267   : > { %v617_v61 = vadd.f32 %v616_v59, %v575_v60 }
 0x268   : > { %v613_v62 = vpop.f32.mrf.mxu1  ;;  %v622_v3 = vpop.f32.mrf.mxu3 }
 0x269   : > { %626 = vst.msk [vmem:[#allocation3 + $0x8] sm:$0xff] %vm348_vm0, %v617_v61  ;;  %v614_v63 = vadd.f32 %v613_v62, %v572_v58 }
 0x26b   : > { %625 = vst.msk [vmem:[#allocation3] sm:$0xff] %vm348_vm0, %v614_v63  ;;  %649 = vrot.lane.b32.xlu0 %v614_v63, %s1000_s25 }
 0x26e   : > { %v578_v1 = vpop.f32.mrf.mxu2 }
 0x26f   : > { %v620_v2 = vadd.f32 %v619_v0, %v578_v1 }
 0x271   : > { %629 = vrot.lane.b32.xlu1 %v620_v2, %s998_s21  ;;  %657 = vrot.lane.b32.xlu2 %v620_v2, %s996_s19 }
 0x273   : > { %651 = vrot.lane.b32.xlu0 %v617_v61, %s1000_s25 }
 0x276   : > { %v581_v4 = vpop.f32.mrf.mxu2 }
 0x277   : > { %v623_v5 = vadd.f32 %v622_v3, %v581_v4 }
 0x279   : > { %631 = vrot.lane.b32.xlu1 %v623_v5, %s998_s21  ;;  %659 = vrot.lane.b32.xlu2 %v623_v5, %s996_s19 }
 0x27b   : > { %639 = vrot.lane.b32.xlu0 %v614_v63, %s996_s19 }
 0x281   : > { %665 = vrot.lane.b32.xlu1 %v614_v63, %s1001_s24  ;;  %673 = vrot.lane.b32.xlu2 %v620_v2, %s1000_s25 }
 0x283   : > { %641 = vrot.lane.b32.xlu0 %v617_v61, %s996_s19 }
 0x289   : > { %667 = vrot.lane.b32.xlu1 %v617_v61, %s1001_s24  ;;  %675 = vrot.lane.b32.xlu2 %v623_v5, %s1000_s25 }
 0x2cb   : > { %v658_v10 = vpop.permute.xlu2 %657 }
 0x2d3   : > { %v660_v14 = vpop.permute.xlu2 %659 }
 0x2db   : > { %v674_v20 = vpop.permute.xlu2 %673 }
 0x2dd   : > { %v650_v11 = vpop.permute.xlu0 %649 }
 0x2de   : > { %655 = vst.msk [vmem:[#allocation3 + $0x20] sm:$0xff] %vm348_vm0, %v650_v11 }
 0x2df   : > { %663 = vst.msk [vmem:[#allocation3 + $0x20] sm:$0xff] %vm434_vm1, %v658_v10 }
 0x2e3   : > { %v630_v12 = vpop.permute.xlu1 %629  ;;  %v676_v26 = vpop.permute.xlu2 %675 }
 0x2e4   : > { %635 = vst.msk [vmem:[#allocation3] sm:$0xff] %vm434_vm1, %v630_v12 }
 0x2e5   : > { %v652_v13 = vpop.permute.xlu0 %651 }
 0x2e6   : > { %656 = vst.msk [vmem:[#allocation3 + $0x28] sm:$0xff] %vm348_vm0, %v652_v13  ;;  %v685_v15 = vld [vmem:[#allocation3 + $0x20] sm:$0xff] }
 0x2e7   : > { %664 = vst.msk [vmem:[#allocation3 + $0x28] sm:$0xff] %vm434_vm1, %v660_v14  ;;  %893 = vmatmul.msk.f32.vlgmr.msrb.gmra.mxu3 %vm485_vm4, %v685_v15 }
 0x2eb   : > { %v632_v16 = vpop.permute.xlu1 %631  ;;  %v681_v17 = vld [vmem:[#allocation3] sm:$0xff] }
 0x2ec   : > { %636 = vst.msk [vmem:[#allocation3 + $0x8] sm:$0xff] %vm434_vm1, %v632_v16  ;;  %889 = vmatmul.msk.f32.vlgmr.msrb.gmra.mxu2 %vm485_vm4, %v681_v17 }
 0x2ed   : > { %v640_v18 = vpop.permute.xlu0 %639 }
 0x2ee   : > { %645 = vst.msk [vmem:[#allocation3 + $0x10] sm:$0xff] %vm348_vm0, %v640_v18  ;;  %v686_v19 = vld [vmem:[#allocation3 + $0x28] sm:$0xff] }
 0x2ef   : > { %647 = vst.msk [vmem:[#allocation3 + $0x10] sm:$0xff] %vm434_vm1, %v620_v2  ;;  %894 = vmatmul.msk.f32.gmra.mxu3 %vm485_vm4, %v686_v19 }
 0x2f3   : > { %v666_v21 = vpop.permute.xlu1 %665  ;;  %v682_v22 = vld [vmem:[#allocation3 + $0x8] sm:$0xff] }
 0x2f4   : > { %671 = vst.msk [vmem:[#allocation3 + $0x30] sm:$0xff] %vm348_vm0, %v666_v21  ;;  %890 = vmatmul.msk.f32.gmra.mxu2 %vm485_vm4, %v682_v22 }
 0x2f5   : > { %679 = vst.msk [vmem:[#allocation3 + $0x30] sm:$0xff] %vm434_vm1, %v674_v20  ;;  %v642_v23 = vpop.permute.xlu0 %641 }
 0x2f6   : > { %646 = vst.msk [vmem:[#allocation3 + $0x18] sm:$0xff] %vm348_vm0, %v642_v23  ;;  %v683_v25 = vld [vmem:[#allocation3 + $0x10] sm:$0xff] }
 0x2f7   : > { %648 = vst.msk [vmem:[#allocation3 + $0x18] sm:$0xff] %vm434_vm1, %v623_v5 }
 0x2fb   : > { %v668_v24 = vpop.permute.xlu1 %667 }
 0x2fc   : > { %672 = vst.msk [vmem:[#allocation3 + $0x38] sm:$0xff] %vm348_vm0, %v668_v24  ;;  %891 = vmatmul.msk.f32.gmra.mxu2 %vm485_vm4, %v683_v25  ;;  %v687_v27 = vld [vmem:[#allocation3 + $0x30] sm:$0xff] }
 0x2fd   : > { %680 = vst.msk [vmem:[#allocation3 + $0x38] sm:$0xff] %vm434_vm1, %v676_v26  ;;  %895 = vmatmul.msk.f32.gmra.mxu3 %vm485_vm4, %v687_v27 }
 0x2fe   : > { %v684_v28 = vld [vmem:[#allocation3 + $0x18] sm:$0xff] }
 0x304   : > { %892 = vmatmul.msk.f32.gmra.mxu2 %vm485_vm4, %v684_v28  ;;  %v688_v29 = vld [vmem:[#allocation3 + $0x38] sm:$0xff] }
 0x305   : > { %896 = vmatmul.msk.f32.gmra.mxu3 %vm485_vm4, %v688_v29 }
 0x36a   : > { %v746_v30 = vpop.f32.mrf.mxu3 }
 0x36b   : > { %762 = vst.msk [vmem:[%s334_s18 + $0x20] sm:$0xff] %vm348_vm0, %v746_v30 }
 0x36f   : > { %v734_v31 = vpop.f32.mrf.mxu2 }
 0x370   : > { %758 = vst.msk [vmem:[%s334_s18] sm:$0xff] %vm348_vm0, %v734_v31 }
 0x372   : > { %v749_v32 = vpop.f32.mrf.mxu3 }
 0x373   : > { %763 = vst.msk [vmem:[%s334_s18 + $0x28] sm:$0xff] %vm348_vm0, %v749_v32 }
 0x377   : > { %v737_v33 = vpop.f32.mrf.mxu2 }
 0x378   : > { %759 = vst.msk [vmem:[%s334_s18 + $0x8] sm:$0xff] %vm348_vm0, %v737_v33 }
 0x37f   : > { %v740_v34 = vpop.f32.mrf.mxu2 }
 0x380   : > { %760 = vst.msk [vmem:[%s334_s18 + $0x10] sm:$0xff] %vm348_vm0, %v740_v34  ;;  %v752_v35 = vpop.f32.mrf.mxu3 }
 0x381   : > { %764 = vst.msk [vmem:[%s334_s18 + $0x30] sm:$0xff] %vm348_vm0, %v752_v35 }
 0x387   : > { %v743_v36 = vpop.f32.mrf.mxu2 }
 0x388   : > { %761 = vst.msk [vmem:[%s334_s18 + $0x18] sm:$0xff] %vm348_vm0, %v743_v36  ;;  %v755_v37 = vpop.f32.mrf.mxu3 }
 0x389   : > { %765 = vst.msk [vmem:[%s334_s18 + $0x38] sm:$0xff] %vm348_vm0, %v755_v37 }
 0x38a PF: > { %s17_s28 = sadd.s32 1, %s994_s28   ;;  %s1250_s24 = smov %s986_s26 }
 0x38b   : > { %p14_p7 = scmp.ge.s32.totalorder %s17_s28, 6   ;;  %s1251_s25 = smov %s990_s27 }
 0x38c   : > { %s1252_s26 = smov %s1255_s29  ;;  %s1253_s27 = smov %s1259_s30 }
 0x38d   :  { %16 = sbr.rel (!%p14_p7) target bundleno = 3 (0x3), region = 81 }

</bundles_post_ra>
